<compile_context>
chip_gen: v5e
topology: v5e:2x2
jax: 0.10.0
libtpu: 0.0.40
codegen_flags: <defaults>
</compile_context>

<pallas_src>
import jax
import jax.numpy as jnp
from jax.experimental import pallas as pl
from jax.experimental.pallas import tpu as pltpu

_LANES = 128
_MIN_TILE_ROWS = 256   # 128 KiB at f32 -- below this, per-step overhead dominates
_TARGET_STEPS = 8      # >= ~8 grid steps: pipelining + both v7x TensorCores


def _round_down(v: int, m: int) -> int:
    return (v // m) * m


def _swish_kernel(x_ref, o_ref):
    xf = x_ref[...].astype(jnp.float32)
    # Exact sigmoid via the tanh identity: sigmoid(x) == 0.5 * tanh(x/2) + 0.5.
    # One EUP op per element (tanh); the mul/add land on otherwise-idle VALU
    # slots, so the kernel stays purely HBM-bound on v5e/v6e/v7x.
    sig = 0.5 * jnp.tanh(0.5 * xf) + 0.5
    o_ref[...] = (xf * sig).astype(o_ref.dtype)


def _vmem_capacity_bytes() -> int:
    try:
        cap = int(getattr(pltpu.get_tpu_info(), "vmem_capacity_bytes", 0))
        if cap > 0:
            return cap
    except Exception:
        pass
    return 64 * 1024 * 1024  # conservative: v7x per-TensorCore VMEM


def _swish_2d(x2d: jax.Array, block_rows: int) -> jax.Array:
    rows, lanes = x2d.shape
    assert lanes == _LANES

    vmem_cap = _vmem_capacity_bytes()
    # Cap the block so 2x double-buffered input + 2x output (at 4 B/elem, since
    # the kernel materializes f32 intermediates) stays within ~half of VMEM.
    max_block_rows = max(_round_down((vmem_cap // 2) // (4 * 4 * _LANES), 32),
                         _MIN_TILE_ROWS)
    block_rows = max(min(block_rows, max_block_rows), _MIN_TILE_ROWS)

    if rows <= _MIN_TILE_ROWS:
        # Tiny tensor: single full-extent block (always a legal block shape).
        tile_rows = rows
    else:
        # Aim for >= _TARGET_STEPS grid steps so DMA and compute overlap and
        # both v7x TensorCores stream rows, while keeping each block large
        # enough (multiple of 32 rows, >= 128 KiB) to amortize the ~0.35 us
        # per-step overhead.  Ragged last block is masked by Pallas.
        tile_rows = _round_down(pl.cdiv(rows, _TARGET_STEPS), 32)
        tile_rows = max(min(tile_rows, block_rows), _MIN_TILE_ROWS)

    grid = (pl.cdiv(rows, tile_rows),)

    block_elems = tile_rows * _LANES
    # 2 input + 2 output buffers at 4 B/elem (f32 intermediates regardless of
    # input dtype) + 25% headroom; explicit request so v5e's 16 MiB scoped
    # default never silently shrinks buffering.
    vmem_need = int(4 * block_elems * 4 * 1.25)
    vmem_limit = min(max(vmem_need, 32 * 1024 * 1024),
                     max(vmem_cap - 16 * 1024 * 1024, 32 * 1024 * 1024))

    return pl.pallas_call(
        _swish_kernel,
        out_shape=jax.ShapeDtypeStruct((rows, _LANES), x2d.dtype),
        grid_spec=pltpu.PrefetchScalarGridSpec(
            num_scalar_prefetch=0,
            grid=grid,
            in_specs=[pl.BlockSpec((tile_rows, _LANES), lambda i: (i, 0))],
            out_specs=pl.BlockSpec((tile_rows, _LANES), lambda i: (i, 0)),
        ),
        compiler_params=pltpu.CompilerParams(
            dimension_semantics=("parallel",),
            vmem_limit_bytes=vmem_limit,
        ),
    )(x2d)


def swish(x: jax.Array, *, block_rows: int = 8192) -> jax.Array:
    """Swish/SiLU: x * sigmoid(x), computed in a Pallas TPU kernel."""
    orig_shape = x.shape
    orig_dtype = x.dtype
    n = x.size
    if n == 0:
        return x

    x_flat = x.reshape(-1)
    rem = n % _LANES

    if rem == 0:
        out2d = _swish_2d(x_flat.reshape(-1, _LANES), block_rows)
        return out2d.reshape(orig_shape)

    # Non-lane-aligned flat size (rare): run the aligned head through the
    # kernel and only the < 128-element tail in plain JAX, instead of a
    # whole-array pad + post-slice (each a full extra HBM pass on a
    # memory-bound kernel).
    n_head = n - rem
    tail = x_flat[n_head:].astype(jnp.float32)
    out_tail = (tail * jax.nn.sigmoid(tail)).astype(orig_dtype)
    if n_head == 0:
        return out_tail.reshape(orig_shape)
    out_head = _swish_2d(x_flat[:n_head].reshape(-1, _LANES), block_rows)
    # TODO(synk): the concatenate still rewrites the head once; a donated /
    # aliased output buffer would remove it, but this path only triggers when
    # numel % 128 != 0.
    out_flat = jnp.concatenate([out_head.reshape(-1), out_tail])
    return out_flat.reshape(orig_shape)


if __name__ == "__main__":
    key = jax.random.PRNGKey(0)
    # NCHW input, consistent with PyTorch conv-style tensors.
    x = jax.random.normal(key, (2, 4, 16, 16), dtype=jnp.float32)

    out = swish(x)
    jax.block_until_ready(out)

    # Sanity check against the pure-JAX reference.  The kernel sigmoid is
    # exact (tanh identity), so a tight tolerance applies.
    ref = x * jax.nn.sigmoid(x)
    assert out.shape == x.shape and out.dtype == x.dtype
    assert jnp.max(jnp.abs(out - ref)) < 1e-5

    print("KERNEL_OK")
</pallas_src>

<mosaic_0001>
module attributes {stable_mosaic.version = 11 : i64} {
  func.func @_swish_kernel(%arg0: i32, %arg1: memref<16x128xf32, #tpu.memory_space<vmem>>, %arg2: memref<16x128xf32, #tpu.memory_space<vmem>>) attributes {dimension_semantics = [#tpu.dimension_semantics<parallel>], iteration_bounds = array<i64: 1>, scalar_prefetch = 0 : i64, scratch_operands = 0 : i64, tpu.core_type = #tpu.core_type<tc>, window_params = [{transform_indices = @transform_0, window_bounds = array<i64: 16, 128>}, {transform_indices = @transform_1, window_bounds = array<i64: 16, 128>}]} {
    %c0 = arith.constant 0 : index
    %c0_0 = arith.constant 0 : index
    %0 = vector.load %arg1[%c0, %c0_0] : memref<16x128xf32, #tpu.memory_space<vmem>>, vector<16x128xf32>
    %cst = arith.constant 5.000000e-01 : f32
    %1 = vector.broadcast %cst : f32 to vector<16x128xf32>
    %2 = arith.mulf %1, %0 : vector<16x128xf32>
    %3 = math.tanh %2 : vector<16x128xf32>
    %cst_1 = arith.constant 5.000000e-01 : f32
    %4 = vector.broadcast %cst_1 : f32 to vector<16x128xf32>
    %5 = arith.mulf %4, %3 : vector<16x128xf32>
    %cst_2 = arith.constant 5.000000e-01 : f32
    %6 = vector.broadcast %cst_2 : f32 to vector<16x128xf32>
    %7 = arith.addf %5, %6 : vector<16x128xf32>
    %8 = arith.mulf %0, %7 : vector<16x128xf32>
    %c0_3 = arith.constant 0 : index
    %c0_4 = arith.constant 0 : index
    %9 = vector.load %arg2[%c0_3, %c0_4] : memref<16x128xf32, #tpu.memory_space<vmem>>, vector<16x128xf32>
    tpu.vector_store %arg2[%c0_3, %c0_4], %8 {strides = array<i32>} : memref<16x128xf32, #tpu.memory_space<vmem>>, vector<16x128xf32>,
    return
  }
  func.func @transform_0(%arg0: i32) -> (i32, i32) {
    %c0_i32 = arith.constant 0 : i32
    %c0_i32_0 = arith.constant 0 : i32
    return %arg0, %c0_i32 : i32, i32
  }
  func.func @transform_1(%arg0: i32) -> (i32, i32) {
    %c0_i32 = arith.constant 0 : i32
    %c0_i32_0 = arith.constant 0 : i32
    return %arg0, %c0_i32 : i32, i32
  }
}

</mosaic_0001>

<bundles_post_ra>
// kernel: tpu_custom_call.1
= control target key start
LH: loop header
LB: loop body
LE: loop exit
PB: predicated region body
PF: predicated region fallthrough
CT: control target
= control target key end

     0   :  { %6 = vsyncpa [#allocation3], 0  ;;  %s138_s0 = inlined_call_operand.hbm [shape: f32[16,128], index: 0, kind: input, shape index: {}]   ;;  %s139_s1 = inlined_call_operand.hbm [shape: f32[16,128], index: 1, kind: output, shape index: {}]  }
   0x1   :  { %7 = vsyncpa [#allocation4], 0  ;;  %s12_s8 = sshll.u32 %s138_s0, 4  ;;  %s118_s9 = smov [#allocation2]   ;;  %s13_s8 = int_to_ptr.hbm [resolvable:$true] %s12_s8 }
   0x2   :  { %s14_s10 = sshll.u32 %s118_s9, 4  ;;  %s119_s11 = smov 128   ;;  %s15_s10 = int_to_ptr.vmem [resolvable:$true] %s14_s10 }
   0x3   :  { %s120_s12 = smov 8  }
   0x4   :  { %20 = dma.hbm_to_vmem [thread:$0]  %s13_s8, 256, %s15_s10, [#allocation3], %s119_s11, %s119_s11, %s120_s12  }
   0x5   :  { %114 = dma.done.wait [#allocation3], 256  }
   0x6   :  { %115 = vsyncadd [#allocation3], 4294967040  ;;  %v25_v0 = vld [vmem:[#allocation2] sm:$0xff]  ;;  %v26_v1 = vld [vmem:[#allocation2 + $0x8] sm:$0xff]  ;;  %s121_s0 = smov [#allocation5]   ;;  %s45_s16 = sshll.u32 %s139_s1, 4  ;;  %s46_s16 = int_to_ptr.hbm [resolvable:$true] %s45_s16 }
   0x7   :  { %v27_v2 = vmul.f32 0.5, %v25_v0  ;;  %v28_v3 = vmul.f32 0.5, %v26_v1  ;;  %s43_s13 = sshll.u32 %s121_s0, 4  ;;  %s44_s13 = int_to_ptr.vmem [resolvable:$true] %s43_s13 }
   0x9   :  { %62 = vtanh.f32 %v27_v2 }
   0xa   :  { %64 = vtanh.f32 %v28_v3 }
   0xf   :  { %v63_v4 = vpop.eup %62 }
  0x10   :  { %v65_v5 = vpop.eup %64  ;;  %v31_v6 = vmul.f32 0.5, %v63_v4 }
  0x11   :  { %v32_v7 = vmul.f32 0.5, %v65_v5 }
  0x12   :  { %v33_v8 = vadd.f32 0.5, %v31_v6 }
  0x13   :  { %v34_v9 = vadd.f32 0.5, %v32_v7 }
  0x14   :  { %v35_v10 = vmul.f32 %v33_v8, %v25_v0 }
  0x15   :  { %v36_v11 = vmul.f32 %v34_v9, %v26_v1 }
  0x16   :  { %37 = vst [vmem:[#allocation5] sm:$0xff] %v35_v10 }
  0x17   :  { %38 = vst [vmem:[#allocation5 + $0x8] sm:$0xff] %v36_v11 }
  0x18   :  { %51 = dma.vmem_to_hbm [thread:$0]  %s44_s13, 256, %s46_s16, [#allocation4], %s119_s11, %s119_s11, %s120_s12  }
  0x19   :  { %116 = dma.done.wait [#allocation4], 256  }
  0x1a   :  { %117 = vsyncadd [#allocation4], 4294967040 }
  0x1b   :  { %56 = vsyncpa [#allocation3], 1 }
  0x1c   :  { %57 = vsyncpa [#allocation4], 1 }

</bundles_post_ra>
